<compile_context>
chip_gen: v7x
topology: tpu7x:2x2x1
jax: 0.10.0
libtpu: 0.0.40
codegen_flags: <defaults>
</compile_context>

<pallas_src>
import jax
import jax.numpy as jnp
from jax import lax
from jax.experimental import pallas as pl
from jax.experimental.pallas import tpu as pltpu

IN_FEATURES = 50
HIDDEN = 18
OUT_FEATURES = 1


def _mlp_kernel(x_ref, w1_ref, b1_ref, w2_ref, b2_ref, o_ref):
    # x_ref: (TB, 50) bf16 streamed tile; weights/biases resident across grid.
    x = x_ref[...]                                                    # (TB, 50) bf16
    h = jnp.dot(x, w1_ref[...], preferred_element_type=jnp.float32)  # (TB, 18) f32
    h = jnp.maximum(h + b1_ref[...], 0.0)                            # ReLU
    # Lane-dense second layer: contract the hidden dim so the result is a
    # (1, TB) row (full 128-lane stores, contiguous writeback) instead of a
    # (TB, 1) column (masked 1/128-lane stores).
    y = lax.dot_general(
        w2_ref[...], h,
        dimension_numbers=(((1,), (1,)), ((), ())),
        preferred_element_type=jnp.float32,
    )                                                                 # (1, TB) f32
    y = y + b2_ref[...]                                               # broadcast (1, 1)
    o_ref[0] = y.astype(o_ref.dtype)                                  # o_ref: (1, 1, TB)


def _round_up(n, m):
    return ((n + m - 1) // m) * m


def mlp_forward(x, w1, b1, w2, b2, *, tb=2048):
    """Forward pass of Linear(50->18) + ReLU + Linear(18->1).

    x: (B, 50) f32; w1: (18, 50); b1: (18,); w2: (1, 18); b2: (1,)  (PyTorch layout).
    Returns (B, 1) f32.
    """
    B = x.shape[0]
    TB = min(tb, _round_up(B, 8))          # batch tile, multiple of 8 sublanes
    B_pad = _round_up(B, TB)
    num_tiles = B_pad // TB

    # Stream x (and the tiny w1) as bf16: halves HBM read bytes on this
    # bandwidth-bound kernel; f32 accumulation keeps numerics sane.
    x_bf16 = x.astype(jnp.bfloat16)
    if B_pad != B:
        x_bf16 = jnp.pad(x_bf16, ((0, B_pad - B), (0, 0)))
    w1_t = w1.T.astype(jnp.bfloat16)                                  # (50, 18)
    b1_2d = b1.reshape(1, HIDDEN).astype(jnp.float32)                 # (1, 18)
    w2_row = w2.reshape(OUT_FEATURES, HIDDEN).astype(jnp.float32)     # (1, 18)
    b2_2d = b2.reshape(1, 1).astype(jnp.float32)                      # (1, 1)

    out = pl.pallas_call(
        _mlp_kernel,
        out_shape=jax.ShapeDtypeStruct((num_tiles, 1, TB), jnp.float32),
        grid=(num_tiles,),
        in_specs=[
            pl.BlockSpec((TB, IN_FEATURES), lambda i: (i, 0)),        # x: streamed tiles
            pl.BlockSpec((IN_FEATURES, HIDDEN), lambda i: (0, 0)),    # w1: resident
            pl.BlockSpec((1, HIDDEN), lambda i: (0, 0)),              # b1: resident
            pl.BlockSpec((OUT_FEATURES, HIDDEN), lambda i: (0, 0)),   # w2: resident
            pl.BlockSpec((1, 1), lambda i: (0, 0)),                   # b2: resident
        ],
        out_specs=pl.BlockSpec((1, 1, TB), lambda i: (i, 0, 0)),      # lane-dense rows
        compiler_params=pltpu.CompilerParams(
            dimension_semantics=("parallel",)),                       # v7x dual-TC
    )(x_bf16, w1_t, b1_2d, w2_row, b2_2d)

    # (num_tiles, 1, TB) -> (B, 1); drop padded tail rows.
    return out.reshape(num_tiles * TB)[:B].reshape(B, 1)


if __name__ == "__main__":
    key = jax.random.PRNGKey(0)
    k_x, k1, k2, k3, k4 = jax.random.split(key, 5)

    # Deterministic init mimicking PyTorch Linear's uniform(-1/sqrt(fan_in), +).
    bound1 = 1.0 / jnp.sqrt(50.0)
    bound2 = 1.0 / jnp.sqrt(18.0)
    w1 = jax.random.uniform(k1, (18, 50), jnp.float32, -bound1, bound1)
    b1 = jax.random.uniform(k2, (18,), jnp.float32, -bound1, bound1)
    w2 = jax.random.uniform(k3, (1, 18), jnp.float32, -bound2, bound2)
    b2 = jax.random.uniform(k4, (1,), jnp.float32, -bound2, bound2)

    def ref_fn(xx):
        # bf16-input-matched reference (kernel streams x/w1 as bf16, f32 accum).
        xb = xx.astype(jnp.bfloat16).astype(jnp.float32)
        w1b = w1.astype(jnp.bfloat16).astype(jnp.float32)
        return jnp.maximum(xb @ w1b.T + b1, 0.0) @ w2.T + b2

    # Small multi-tile run: B=16 with an 8-row tile -> grid of 2 steps
    # (exercises pipelining, resident weights, lane-dense output path).
    B = 16
    x = jax.random.normal(k_x, (B, 50), jnp.float32)
    out = jax.block_until_ready(mlp_forward(x, w1, b1, w2, b2, tb=8))
    assert out.shape == (B, 1)
    assert jnp.allclose(out, ref_fn(x), atol=1e-4, rtol=1e-4)

    # Ragged batch (B=13) exercises the padded tail handling.
    x2 = jax.random.normal(jax.random.PRNGKey(1), (13, 50), jnp.float32)
    out2 = jax.block_until_ready(mlp_forward(x2, w1, b1, w2, b2))
    assert out2.shape == (13, 1)
    assert jnp.allclose(out2, ref_fn(x2), atol=1e-4, rtol=1e-4)

    print("KERNEL_OK")
</pallas_src>

<mosaic_0001>
module attributes {stable_mosaic.version = 11 : i64} {
  func.func @_mlp_kernel(%arg0: i32, %arg1: memref<8x50xbf16, #tpu.memory_space<vmem>>, %arg2: memref<50x18xbf16, #tpu.memory_space<vmem>>, %arg3: memref<1x18xf32, #tpu.memory_space<vmem>>, %arg4: memref<1x18xf32, #tpu.memory_space<vmem>>, %arg5: memref<1x1xf32, #tpu.memory_space<vmem>>, %arg6: memref<1x1x8xf32, #tpu.memory_space<vmem>>) attributes {dimension_semantics = [#tpu.dimension_semantics<parallel>], iteration_bounds = array<i64: 2>, scalar_prefetch = 0 : i64, scratch_operands = 0 : i64, tpu.core_type = #tpu.core_type<tc>, window_params = [{transform_indices = @transform_0, window_bounds = array<i64: 8, 50>}, {pipeline_mode = #tpu.pipeline_mode<synchronous>, transform_indices = @transform_1, window_bounds = array<i64: 50, 18>}, {pipeline_mode = #tpu.pipeline_mode<synchronous>, transform_indices = @transform_2, window_bounds = array<i64: 1, 18>}, {pipeline_mode = #tpu.pipeline_mode<synchronous>, transform_indices = @transform_3, window_bounds = array<i64: 1, 18>}, {pipeline_mode = #tpu.pipeline_mode<synchronous>, transform_indices = @transform_4, window_bounds = array<i64: 1, 1>}, {transform_indices = @transform_5, window_bounds = array<i64: 1, 1, 8>}]} {
    %c0 = arith.constant 0 : index
    %c0_0 = arith.constant 0 : index
    %0 = vector.load %arg1[%c0, %c0_0] : memref<8x50xbf16, #tpu.memory_space<vmem>>, vector<8x50xbf16>
    %c0_1 = arith.constant 0 : index
    %c0_2 = arith.constant 0 : index
    %1 = vector.load %arg2[%c0_1, %c0_2] : memref<50x18xbf16, #tpu.memory_space<vmem>>, vector<50x18xbf16>
    %cst = arith.constant dense<0.000000e+00> : vector<8x18xf32>
    %2 = tpu.matmul %0, %1, %cst {dimension_numbers = #tpu.dot_dimension_numbers<[1], [0], [0], [1], [0, 0, 1, 1], [], []>} : vector<8x50xbf16>, vector<50x18xbf16>, vector<8x18xf32> -> vector<8x18xf32>
    %c0_3 = arith.constant 0 : index
    %c0_4 = arith.constant 0 : index
    %3 = vector.load %arg3[%c0_3, %c0_4] : memref<1x18xf32, #tpu.memory_space<vmem>>, vector<1x18xf32>
    %4 = vector.broadcast %3 : vector<1x18xf32> to vector<8x18xf32>
    %5 = arith.addf %2, %4 : vector<8x18xf32>
    %cst_5 = arith.constant 0.000000e+00 : f32
    %6 = vector.broadcast %cst_5 : f32 to vector<8x18xf32>
    %7 = arith.maximumf %5, %6 : vector<8x18xf32>
    %c0_6 = arith.constant 0 : index
    %c0_7 = arith.constant 0 : index
    %8 = vector.load %arg4[%c0_6, %c0_7] : memref<1x18xf32, #tpu.memory_space<vmem>>, vector<1x18xf32>
    %cst_8 = arith.constant dense<0.000000e+00> : vector<1x8xf32>
    %9 = tpu.matmul %8, %7, %cst_8 {dimension_numbers = #tpu.dot_dimension_numbers<[1], [1], [0], [0], [0, 0, 1, 0], [], []>} : vector<1x18xf32>, vector<8x18xf32>, vector<1x8xf32> -> vector<1x8xf32>
    %c0_9 = arith.constant 0 : index
    %c0_10 = arith.constant 0 : index
    %10 = vector.load %arg5[%c0_9, %c0_10] : memref<1x1xf32, #tpu.memory_space<vmem>>, vector<1x1xf32>
    %11 = vector.broadcast %10 : vector<1x1xf32> to vector<1x8xf32>
    %12 = arith.addf %9, %11 : vector<1x8xf32>
    %c0_11 = arith.constant 0 : index
    %c0_12 = arith.constant 0 : index
    %c0_13 = arith.constant 0 : index
    %13 = vector.load %arg6[%c0_11, %c0_12, %c0_13] : memref<1x1x8xf32, #tpu.memory_space<vmem>>, vector<1x1x8xf32>
    %14 = vector.shape_cast %13 : vector<1x1x8xf32> to vector<1x8xf32>
    %15 = vector.shape_cast %12 : vector<1x8xf32> to vector<1x1x8xf32>
    tpu.vector_store %arg6[%c0_11, %c0_12, %c0_13], %15 {strides = array<i32>} : memref<1x1x8xf32, #tpu.memory_space<vmem>>, vector<1x1x8xf32>,
    return
  }
  func.func @transform_0(%arg0: i32) -> (i32, i32) {
    %c0_i32 = arith.constant 0 : i32
    %c0_i32_0 = arith.constant 0 : i32
    return %arg0, %c0_i32 : i32, i32
  }
  func.func @transform_1(%arg0: i32) -> (i32, i32) {
    %c0_i32 = arith.constant 0 : i32
    %c0_i32_0 = arith.constant 0 : i32
    %c0_i32_1 = arith.constant 0 : i32
    return %c0_i32, %c0_i32_0 : i32, i32
  }
  func.func @transform_2(%arg0: i32) -> (i32, i32) {
    %c0_i32 = arith.constant 0 : i32
    %c0_i32_0 = arith.constant 0 : i32
    %c0_i32_1 = arith.constant 0 : i32
    return %c0_i32, %c0_i32_0 : i32, i32
  }
  func.func @transform_3(%arg0: i32) -> (i32, i32) {
    %c0_i32 = arith.constant 0 : i32
    %c0_i32_0 = arith.constant 0 : i32
    %c0_i32_1 = arith.constant 0 : i32
    return %c0_i32, %c0_i32_0 : i32, i32
  }
  func.func @transform_4(%arg0: i32) -> (i32, i32) {
    %c0_i32 = arith.constant 0 : i32
    %c0_i32_0 = arith.constant 0 : i32
    %c0_i32_1 = arith.constant 0 : i32
    return %c0_i32, %c0_i32_0 : i32, i32
  }
  func.func @transform_5(%arg0: i32) -> (i32, i32, i32) {
    %c0_i32 = arith.constant 0 : i32
    %c0_i32_0 = arith.constant 0 : i32
    %c0_i32_1 = arith.constant 0 : i32
    return %arg0, %c0_i32, %c0_i32_0 : i32, i32, i32
  }
}

</mosaic_0001>

<bundles_post_ra>
// kernel: tpu_custom_call.1
= control target key start
LH: loop header
LB: loop body
LE: loop exit
PB: predicated region body
PF: predicated region fallthrough
CT: control target
= control target key end

     0   :  { %s771_s0 = inlined_call_operand.vmem [shape: bf16[16,50], index: 0, kind: input, shape index: {}]   ;;  %s772_s1 = inlined_call_operand.vmem [shape: bf16[50,18], index: 1, kind: input, shape index: {}]   ;;  %s773_s2 = inlined_call_operand.vmem [shape: f32[1,18], index: 2, kind: input, shape index: {}]   ;;  %s774_s3 = inlined_call_operand.vmem [shape: f32[1,18], index: 3, kind: input, shape index: {}]   ;;  %s775_s4 = inlined_call_operand.<no memory space> [shape: f32[1,1], index: 4, kind: input, shape index: {}]   ;;  %s776_s5 = inlined_call_operand.hbm [shape: f32[2,1,8], index: 5, kind: output, shape index: {}]  }
   0x1   :  { %v10_v0 = vstv %s775_s4 }
   0x2   :  { %11 = vst [vmem:[#allocation2] sm:$0x1] %v10_v0 }
   0x3   :  { %12 = vsyncpa [#allocation4], 0 }
   0x4   :  { %14 = vsyncpa [#allocation4 + $0x1], 0  ;;  %s653_s20 = smov 0   ;;  %s655_s21 = smov 0  }
   0x5   :  { %s657_s22 = smov 0   ;;  %s659_s23 = smov 0  }
   0x6 LB: > { %s674_s4 = sadd.s32 4294967295, %s614_s23   ;;  %s465_s24 = sadd.s32 4294967294, %s614_s23   ;;  %s614_s23 = sphi %s659_s23, %s782_s23   ;;  %s610_s22 = sphi %s657_s22, %s781_s22   ;;  %s606_s21 = sphi %s655_s21, %s780_s21   ;;  %s602_s20 = sphi %s653_s20, %s779_s20  }
   0x7   : > { %s678_s25 = sadd.s32 1, %s614_s23   ;;  %s137_s26 = sadd.s32 1, %s610_s22 }
   0x8   : > { %s134_s27 = ssub.s32 %s614_s23, %s678_s25  ;;  %p147_p0 = scmp.ne.s32.totalorder %s610_s22, %s606_s21 }
   0x9   : > { %p135_p1 = scmp.eq.s32.totalorder %s134_s27, 0  ;;  %p148_p2 = scmp.eq.s32.totalorder %s674_s4, 1 }
   0xa   : > { %p153_p3 = scmp.ne.s32.totalorder %s606_s21, %s602_s20  ;;  %p154_p4 = scmp.eq.s32.totalorder %s465_s24, 1 }
   0xb   : > { %s689_s28 = scalar_select %p135_p1, %s610_s22, %s137_s26  }
   0xc   : > { %p691_p5 = por %p148_p2, %p147_p0  ;;  %p695_p6 = por %p154_p4, %p153_p3 }
   0xd   : > { %p468_p7 = scmp.ge.s32.totalorder %s614_s23, 1  ;;  %p191_p8 = scmp.lt.s32.totalorder %s614_s23, 3 }
   0xf   : > { %p192_p9 = pnand %p468_p7, %p191_p8 }
  0x10   : > { %v548_v1 = vld [vmem:[%s772_s1] sm:$0xff] (!%p192_p9)   ;;  %v616_v2 = vmov (!%p192_p9), 0.0   ;;  %v549_v3 = vld [vmem:[%s772_s1 + $0x8] sm:$0xff] (!%p192_p9)   ;;  %vm617_vm0 = vmmov (!%p192_p9), 0   ;;  %p217_p10 = scmp.lt.s32.totalorder (!%p192_p9), %s674_s4, 1  ;;  %v550_v4 = vld [vmem:[%s772_s1 + $0x10] sm:$0xff] (!%p192_p9)   ;;  %v314_v18 = vlaneseq (!%p192_p9) }
  0x11   : > { %195 = sbr.rel (%p192_p9) target bundleno = 480 (0x1e0), region = 40  ;;  %488 = vmatprep.subr.bf16.mxu0 (!%p192_p9), %v616_v2  ;;  %500 = vmatprep.subr.mxu1 (!%p192_p9), %v616_v2  ;;  %v551_v5 = vld [vmem:[%s772_s1 + $0x18] ss:$0 sps:$4 sm:$0x11] (!%p192_p9)   ;;  %vm262_vm1 = vcmask (!%p192_p9), 1040384   ;;  %vm258_vm2 = vcmask (!%p192_p9), 408576  }
  0x12   : > { %489 = vmatpush3.bf16.msra.mxu0 (!%p192_p9), %v548_v1  ;;  %496 = vmatprep.mubr.msk.bf16.mxu0 (!%p192_p9), %vm617_vm0, %v616_v2  ;;  %v264_v6 = vsel (!%p192_p9), %vm262_vm1, %v551_v5, 0  ;;  %v308_v8 = vld [vmem:[#allocation2] sm:$0x1] (!%p192_p9)  ;;  %v618_v9 = vmov (!%p192_p9), 0   ;;  %vm318_vm3 = vcmask (!%p192_p9), 146432   ;;  %v315_v19 = vshrl.u32 (!%p192_p9), %v314_v18, 7 }
  0x13   : > { %490 = vmatprep.subr.bf16.mxu0 (!%p192_p9), %v616_v2  ;;  %502 = vmatprep.mubr.msk.f32.mxu1 (!%p192_p9), %vm617_vm0, %v616_v2  ;;  %v470_v10 = vld [vmem:[%s773_s2] ss:$0 sm:$0xff] (!%p192_p9)  ;;  %s215_s6 = sand.u32 (!%p192_p9), 1, %s606_s21   ;;  %s478_s7 = sshll.u32 (!%p192_p9), %s674_s4, 4  ;;  %vm395_vm4 = vcmask (!%p192_p9), 57344  }
  0x14   : > { %547 = vset.pattern.permute.xlu0 (!%p192_p9), %v618_v9  ;;  %v307_v17 = vld [vmem:[%s774_s3] sm:$0x1] (!%p192_p9)  ;;  %v316_v20 = vsub.s32 (!%p192_p9), 0, %v315_v19  ;;  %s216_s8 = scalar_lea.vmem (!%p192_p9), [#allocation3], %s215_s6  ;;  %s729_s12 = scalar_lea.hbm (!%p192_p9), %s776_s5, %s478_s7 }
  0x15   : > { %311 = vperm.xlu0 (!%p192_p9), %547, %v308_v8   ;;  %s410_s9 = sshll.u32 (!%p192_p9), %s216_s8, 4  ;;  %s398_s13 = scalar_lea.sflag (!%p192_p9), [#allocation4], %s215_s6  ;;  %s731_s9 = int_to_ptr.vmem [resolvable:$true] %s410_s9 }
  0x16   : > { %491 = vmatpush3.bf16.msra.mxu0 (!%p192_p9), %v549_v3  ;;  %s552_s14 = scalar_lea.vmem (!%p192_p9), %s731_s9, 16 }
  0x17   : > { %492 = vmatprep.subr.bf16.mxu0 (!%p192_p9), %v616_v2  ;;  %p553_p11 = scmp.ne.s32.totalorder (!%p192_p9), %s731_s9, %s552_s14 }
  0x18   : > { %s218_s10 = scalar_select %p217_p10, %s674_s4, 1 }
  0x19   : > { %p554_p12 = pnand %p553_p11, %p691_p5  ;;  %s619_s4 = smov [#allocation3]  }
  0x1a   : > { %s469_s15 = sshll.u32 %s218_s10, 2  ;;  %493 = vmatpush3.bf16.msra.mxu0 %v550_v4 }
  0x1b   : > { %494 = vmatprep.subr.bf16.mxu0 %v616_v2  ;;  %s220_s18 = scalar_lea.vmem %s771_s0, %s469_s15  ;;  %p555_p13 = pneg %p554_p12 }
  0x1c   : > { %v222_v7 = vld [vmem:[%s220_s18] sm:$0xf]  ;;  %s556_s15 = sshll.u32 %s619_s4, 4  ;;  %s557_s15 = int_to_ptr.vmem [resolvable:$false] %s556_s15 }
  0x1d   : > { %s558_s16 = scalar_lea.vmem %s557_s15, 32  ;;  %p559_p0 = scmp.lt.s32.totalorder %s731_s9, %s557_s15 }
  0x1e   : > { %495 = vmatpush3.bf16.msra.mxu0 %v264_v6  ;;  %p560_p1 = scmp.lt.s32.totalorder %s558_s16, %s552_s14 }
  0x20   : > { %p561_p2 = por %p560_p1, %p559_p0 }
  0x21   : > { %497 = vmatmul.mubr.msk.bf16.vlgmr.msra.gmra.mrb[0].mxu0 %vm258_vm2, %v222_v7 }
  0x22   : > { %p562_p3 = pnand %p561_p2, %p555_p13 }
  0x94   : > { %v312_v21 = vpop.permute.xlu0 %311 }
  0x95   : > { %v317_v22 = vrot.slane %v312_v21, %v316_v20 }
  0xf4   : > { %v300_v11 = vpop.f32.mrb[0].mxu0 }
  0xf5   : > { %v301_v12 = vadd.f32 %v470_v10, %v300_v11  ;;  %v498_v13 = vpop.f32.mrb[1].mxu0 }
  0xf6   : > { %v303_v14 = vpop.f32.mrb[2].mxu0 }
  0xf7   : > { %v306_v15 = vmax.f32 %v301_v12, 0.0  ;;  %v499_v16 = vpop.f32.mrb[3].mxu0 }
  0xf9   : > { %501 = vmatpush3.xpose.msk.msra.mxu1 %vm318_vm3, %v306_v15 }
  0xfc   : > { %503 = vmatmul.mubr.msk.f32.vlgmr.msra.gmra.mrb[0].mxu1 %vm318_vm3, %v307_v17 }
 0x1cf   : > { %v391_v23 = vpop.f32.mrb[0].mxu1 }
 0x1d0   : > { %v392_v24 = vadd.f32 %v391_v23, %v317_v22  ;;  %v504_v25 = vpop.f32.mrb[1].mxu1 }
 0x1d2   : > { %396 = vst.msk [vmem:[%s216_s8] sm:$0x1] %vm395_vm4, %v392_v24 }
 0x1d3   : > { %565 = shalt.err (!%p562_p3)
}
 0x1d4   : > { %s566_s17 = scalar_lea.hbm %s729_s12, 16  ;;  %s570_s24 = scalar_lea.hbm %s776_s5, 32 }
 0x1d5   : > { %p567_p4 = scmp.ne.s32.totalorder %s729_s12, %s566_s17  ;;  %p571_p9 = scmp.lt.u32.totalorder %s729_s12, %s776_s5 }
 0x1d6   : > { %p572_p10 = scmp.lt.u32.totalorder %s570_s24, %s566_s17  ;;  %p574_p12 = scmp.lt.u32.totalorder %s566_s17, %s729_s12 }
 0x1d7   : > { %p568_p7 = pnand %p567_p4, %p691_p5 }
 0x1d8   : > { %p573_p11 = por %p572_p10, %p571_p9 }
 0x1d9   : > { %p569_p8 = pneg %p568_p7 }
 0x1da   : > { %p575_p13 = por %p574_p12, %p573_p11 }
 0x1dc   : > { %p576_p0 = pnand %p575_p13, %p569_p8 }
 0x1de   : > { %579 = shalt.err (!%p576_p0)
}
 0x1df   : > { %505 = dma.vmem_to_hbm [thread:$0]  (%p691_p5), %s731_s9, 16, %s729_s12, %s398_s13  }
 0x1e0 PF: > { %p511_p1 = scmp.ge.s32.totalorder %s614_s23, 2  ;;  %s422_s6 = sand.u32 1, %s602_s20  }
 0x1e1   : > { %s423_s7 = scalar_lea.sflag [#allocation4], %s422_s6 }
 0x1e2   : > { %p508_p2 = pnand %p511_p1, %p695_p6 }
 0x1e4   : > { %597 = dma.done.wait (!%p508_p2), %s423_s7, 16  }
 0x1e5   : > { %599 = vsyncadd (!%p508_p2), %s423_s7, 4294967280  ;;  %p17_p3 = scmp.ge.s32.totalorder %s678_s25, 4   ;;  %s779_s20 = smov %s606_s21 }
 0x1e6   : > { %s780_s21 = smov %s610_s22  ;;  %s781_s22 = smov %s689_s28 }
 0x1e7   : > { %s782_s23 = smov %s678_s25  ;;  %19 = sbr.rel (!%p17_p3) target bundleno = 6 (0x6), region = 75 }
 0x1ee   :  { %427 = vsyncpa [#allocation4], 1 }
 0x1ef   :  { %429 = vsyncpa [#allocation4 + $0x1], 1 }

</bundles_post_ra>
